<compile_context>
chip_gen: v5e
topology: v5e:2x2
jax: 0.10.0
libtpu: 0.0.40
codegen_flags: <defaults>
</compile_context>

<pallas_src>
from functools import partial

import numpy as np
import jax
import jax.numpy as jnp
from jax import lax
from jax.experimental import pallas as pl
from jax.experimental.pallas import tpu as pltpu  # noqa: F401  (not needed at this footprint)

# ---- configuration (consistent with the module constructor) ----
B = 2        # batch
N = 8        # number of nodes
DM = 32      # embedding_dim
E = 3        # num_edge_types
DP = 16      # dot_product_dim
M = 2        # num_mixture_components (>1 -> mixture branch active)
NUM_HIDDEN = 1
OUT = E * DP          # out_dim = dot_product_dim * num_edge_types          (48)
MOUT = M * OUT        # batched (across mixture components) feature width   (96)


# ---------------------------------------------------------------------------
# Fused kernel: whole batch, all mixture components, mixture logits — one step.
# ---------------------------------------------------------------------------
def _fused_kernel(*refs, b_sz, n, dm, m_comp, e, dp, out_dim, has_prev_adj):
    it = iter(refs)
    x_ref = next(it)                        # (B*N, DM)
    mb_ref = next(it)                       # (B, B*N)  block-diag mask, pre-scaled by 1/count
    pa_ref = next(it) if has_prev_adj else None   # (B, N, M*E*N)
    wA_ref = next(it)                       # (DM, M*OUT + 2*DM + M)  = [W1c | Wn | Wg1 | Wg2]
    w2_ref = next(it)                       # (M*OUT, M*OUT) block-diag
    w3_ref = next(it)                       # (M*OUT, M*OUT) block-diag
    bias_ref = next(it)                     # (5, M*OUT+DM) rows: [b1c|bn], b2c, b3c, bg1, bg2
    edge_ref = next(it)                     # (B*N, M*E*N)
    mix_ref = next(it)                      # (B, M)

    f32 = jnp.float32
    mout = m_comp * out_dim

    x = x_ref[...]                          # (B*N, DM)

    # --- stage 1: node-MLP layer 1 + mixture node MLP fused into one MXU pass ---
    hw = jnp.dot(x, wA_ref[:, 0:mout + dm], preferred_element_type=f32)
    hw = jnp.maximum(hw + bias_ref[0:1, 0:mout + dm], 0.0)        # (B*N, MOUT+DM)
    h = hw[:, 0:mout]                                             # (B*N, MOUT)
    hn = hw[:, mout:mout + dm]                                    # (B*N, DM)

    # --- stage 2: hidden layer of all node MLPs (block-diagonal W2) ---
    feat = jnp.dot(h, w2_ref[...], preferred_element_type=f32)
    feat = jnp.maximum(feat + bias_ref[1:2, 0:mout], 0.0)         # (B*N, MOUT)

    # --- stage 3: bilinear-form linear layer (block-diagonal W3) ---
    lin = jnp.dot(feat, w3_ref[...], preferred_element_type=f32) + bias_ref[2:3, 0:mout]

    # --- mixture logits (num_mixture_components > 1 branch) ---
    graph_rep = jnp.dot(mb_ref[...], hn, preferred_element_type=f32)        # (B, DM)
    g = jnp.dot(graph_rep, wA_ref[:, mout + dm:mout + 2 * dm],
                preferred_element_type=f32)
    g = jnp.maximum(g + bias_ref[3:4, 0:dm], 0.0)                           # (B, DM)
    ml = (jnp.dot(g, wA_ref[:, mout + 2 * dm:mout + 2 * dm + m_comp],
                  preferred_element_type=f32)
          + bias_ref[4:5, 0:m_comp])                                        # (B, M)
    ml = ml - jnp.max(ml, axis=-1, keepdims=True)
    mix_ref[...] = (ml - jnp.log(jnp.sum(jnp.exp(ml), axis=-1, keepdims=True))
                    ).astype(mix_ref.dtype)

    # --- pairwise edge scores ---
    # One (B*N, B*N) score matrix per (mixture, edge type); only the per-batch diagonal
    # blocks are used (cross-batch blocks are dead compute but keep the batch folded into
    # MXU rows).  Symmetrization uses a second dot with swapped operands (no transpose).
    contract = (((1,), (1,)), ((), ()))
    sym_full = []
    for k in range(m_comp * e):
        lo = k * dp
        fe = feat[:, lo:lo + dp]                                  # (B*N, DP)
        le = lin[:, lo:lo + dp]                                   # (B*N, DP)
        s = lax.dot_general(fe, le, contract, preferred_element_type=f32)    # (B*N, B*N)
        st = lax.dot_general(le, fe, contract, preferred_element_type=f32)   # = s.T
        sym_full.append(0.5 * (s + st))

    per_b = []
    for b in range(b_sz):
        r0 = b * n
        pa_b = pa_ref[b] if has_prev_adj else None                # (N, M*E*N)
        cols = []
        for m in range(m_comp):
            grp = []
            for et in range(e):
                k = m * e + et
                blk = sym_full[k][r0:r0 + n, r0:r0 + n]           # (N, N)
                if has_prev_adj:
                    blk = blk + pa_b[:, k * n:(k + 1) * n]
                grp.append(blk)
            # log_softmax over edge types, elementwise across the E (N, N) slabs
            mx = grp[0]
            for sblk in grp[1:]:
                mx = jnp.maximum(mx, sblk)
            tot = jnp.exp(grp[0] - mx)
            for sblk in grp[1:]:
                tot = tot + jnp.exp(sblk - mx)
            lse = mx + jnp.log(tot)
            cols.extend([sblk - lse for sblk in grp])
        per_b.append(jnp.concatenate(cols, axis=-1))              # (N, M*E*N)

    # single lane-dense store of the whole edge output
    edge_ref[...] = jnp.concatenate(per_b, axis=0).astype(edge_ref.dtype)   # (B*N, M*E*N)


# ---------------------------------------------------------------------------
# One-time parameter packing (hoisted out of the per-call forward path)
# ---------------------------------------------------------------------------
def prepare_params(params):
    w1c = jnp.concatenate([params["w1"][m] for m in range(M)], axis=-1)     # (DM, MOUT)
    wA = jnp.concatenate([w1c, params["wn"], params["wg1"], params["wg2"]],
                         axis=-1)                                           # (DM, MOUT+2*DM+M)
    w2bd = jax.scipy.linalg.block_diag(*[params["w2"][m] for m in range(M)])
    w3bd = jax.scipy.linalg.block_diag(*[params["w3"][m] for m in range(M)])

    b1c = jnp.concatenate([params["b1"][m] for m in range(M)], axis=-1)     # (1, MOUT)
    b2c = jnp.concatenate([params["b2"][m] for m in range(M)], axis=-1)
    b3c = jnp.concatenate([params["b3"][m] for m in range(M)], axis=-1)

    width = MOUT + DM   # 128 at these sizes -> lane-aligned rows

    def _row(v):
        return jnp.pad(v, ((0, 0), (0, width - v.shape[-1])))

    bias = jnp.concatenate([
        _row(jnp.concatenate([b1c, params["bn"]], axis=-1)),   # row 0: [b1c | bn]
        _row(b2c),                                             # row 1
        _row(b3c),                                             # row 2
        _row(params["bg1"]),                                   # row 3
        _row(params["bg2"]),                                   # row 4
    ], axis=0)                                                 # (5, MOUT+DM)
    return {"wA": wA, "w2bd": w2bd, "w3bd": w3bd, "bias": bias}


# ---------------------------------------------------------------------------
# Wrapper
# ---------------------------------------------------------------------------
def edge_predictor_forward(x, mask, packed, prev_adj=None):
    """x: (B, N, DM) f32, mask: (B, N) f32, packed: prepare_params(params),
    prev_adj: (B, N, N, E) one-hot or None.
    Returns (mixture_logits (B, M), edge_logits (B, M, N, N, E))."""
    b_, n_, dm_ = x.shape
    has_prev_adj = prev_adj is not None
    men = M * E * n_

    x_flat = x.reshape(b_ * n_, dm_)

    # masked-mean folded into a block-diagonal (B, B*N) matrix (pre-scaled by 1/count).
    # NOTE: an all-zero mask row yields inf here (same divide-by-zero behavior as the module).
    inv_cnt = 1.0 / jnp.sum(mask, axis=-1, keepdims=True)          # (B, 1)
    scaled = mask * inv_cnt                                        # (B, N)
    eye = jnp.eye(b_, dtype=x.dtype)
    mask_block = (eye[:, :, None] * scaled[None, :, :]).reshape(b_, b_ * n_)

    inputs = [x_flat, mask_block]
    if has_prev_adj:
        # pack to the kernel's (B, N, M*E*N) score layout (same E*N slab tiled across m)
        pa_t = jnp.transpose(prev_adj, (0, 1, 3, 2)).reshape(b_, n_, 1, E * n_)
        pa_pack = jnp.broadcast_to(pa_t, (b_, n_, M, E * n_)).reshape(b_, n_, men)
        inputs.append(pa_pack)
    inputs += [packed["wA"], packed["w2bd"], packed["w3bd"], packed["bias"]]

    kernel = partial(_fused_kernel, b_sz=b_, n=n_, dm=dm_, m_comp=M, e=E, dp=DP,
                     out_dim=OUT, has_prev_adj=has_prev_adj)

    # Single step, whole arrays in VMEM (no grid): total footprint is a few hundred KB.
    edge_flat, mix = pl.pallas_call(
        kernel,
        out_shape=(jax.ShapeDtypeStruct((b_ * n_, men), jnp.float32),
                   jax.ShapeDtypeStruct((b_, M), jnp.float32)),
    )(*inputs)

    # layout plumbing back to the module's (B, M, N, N, E) output, done in XLA
    edge_logits = edge_flat.reshape(b_, n_, M, E, n_).transpose(0, 2, 1, 4, 3)
    # TODO(synk): the num_mixture_components == 1 branch (constant-zero mixture logits)
    # is not exercised by this configuration (M=2) and is not implemented here.
    return mix, edge_logits


# ---------------------------------------------------------------------------
# Deterministic parameter init (weights stored as (in, out) -> y = x @ W + b)
# ---------------------------------------------------------------------------
def init_params(key):
    ks = jax.random.split(key, 12)
    s = 0.1
    return {
        "w1": s * jax.random.normal(ks[0], (M, DM, OUT), jnp.float32),
        "b1": s * jax.random.normal(ks[1], (M, 1, OUT), jnp.float32),
        "w2": s * jax.random.normal(ks[2], (M, OUT, OUT), jnp.float32),
        "b2": s * jax.random.normal(ks[3], (M, 1, OUT), jnp.float32),
        "w3": s * jax.random.normal(ks[4], (M, OUT, OUT), jnp.float32),
        "b3": s * jax.random.normal(ks[5], (M, 1, OUT), jnp.float32),
        "wn": s * jax.random.normal(ks[6], (DM, DM), jnp.float32),
        "bn": s * jax.random.normal(ks[7], (1, DM), jnp.float32),
        "wg1": s * jax.random.normal(ks[8], (DM, DM), jnp.float32),
        "bg1": s * jax.random.normal(ks[9], (1, DM), jnp.float32),
        "wg2": s * jax.random.normal(ks[10], (DM, M), jnp.float32),
        "bg2": s * jax.random.normal(ks[11], (1, M), jnp.float32),
    }


# ---------------------------------------------------------------------------
# Pure-JAX reference (mirrors the PyTorch forward)
# ---------------------------------------------------------------------------
def reference_forward(x, mask, params, prev_adj=None):
    b_, n_, _ = x.shape
    if prev_adj is None:
        prev_adj = jnp.zeros((b_, n_, n_, E), jnp.float32)
    feats, lins = [], []
    for m in range(M):
        h = jax.nn.relu(x @ params["w1"][m] + params["b1"][m])
        f = jax.nn.relu(h @ params["w2"][m] + params["b2"][m])
        l = f @ params["w3"][m] + params["b3"][m]
        feats.append(f.reshape(b_, n_, E, DP))
        lins.append(l.reshape(b_, n_, E, DP))
    feats = jnp.stack(feats, axis=1)   # (B, M, N, E, DP)
    lins = jnp.stack(lins, axis=1)
    logits = jnp.einsum("bmied,bmjed->bmije", feats, lins)
    logits = 0.5 * (logits + jnp.swapaxes(logits, -2, -3))
    logits = logits + prev_adj[:, None]
    logits = jax.nn.log_softmax(logits, axis=-1)

    h = jax.nn.relu(x @ params["wn"] + params["bn"])
    graph_rep = (jnp.sum(h * mask[..., None], axis=-2)
                 / jnp.sum(mask, axis=-1, keepdims=True))
    g = jax.nn.relu(graph_rep @ params["wg1"] + params["bg1"])
    ml = g @ params["wg2"] + params["bg2"]
    ml = jax.nn.log_softmax(ml, axis=-1)
    return ml, logits


if __name__ == "__main__":
    key = jax.random.PRNGKey(0)
    kx, kp, ka = jax.random.split(key, 3)
    x = jax.random.normal(kx, (B, N, DM), jnp.float32)
    mask = jnp.ones((B, N), jnp.float32).at[1, 6:].set(0.0)  # batch 1 has 6 valid nodes
    params = init_params(kp)
    packed = prepare_params(params)          # one-time weight packing, hoisted out of forward

    fwd = jax.jit(edge_predictor_forward)

    # --- path 1: prev_adj = None (no extra input stream, add compiled out) ---
    mix_logits, edge_logits = fwd(x, mask, packed)
    jax.block_until_ready((mix_logits, edge_logits))
    ref_mix, ref_edge = reference_forward(x, mask, params)
    assert np.allclose(np.asarray(mix_logits), np.asarray(ref_mix),
                       atol=1e-4, rtol=1e-3), "mixture logits mismatch (no prev_adj)"
    assert np.allclose(np.asarray(edge_logits), np.asarray(ref_edge),
                       atol=1e-4, rtol=1e-3), "edge logits mismatch (no prev_adj)"

    # --- path 2: one-hot prev_adj supplied ---
    prev_idx = jax.random.randint(ka, (B, N, N), 0, E)
    prev_adj = jax.nn.one_hot(prev_idx, E, dtype=jnp.float32)
    mix2, edge2 = fwd(x, mask, packed, prev_adj)
    jax.block_until_ready((mix2, edge2))
    ref_mix2, ref_edge2 = reference_forward(x, mask, params, prev_adj)
    assert np.allclose(np.asarray(mix2), np.asarray(ref_mix2),
                       atol=1e-4, rtol=1e-3), "mixture logits mismatch (prev_adj)"
    assert np.allclose(np.asarray(edge2), np.asarray(ref_edge2),
                       atol=1e-4, rtol=1e-3), "edge logits mismatch (prev_adj)"

    print("KERNEL_OK")
</pallas_src>

<mosaic_0001>
module attributes {stable_mosaic.version = 11 : i64} {
  func.func @_fused_kernel(%arg0: memref<16x32xf32, #tpu.memory_space<vmem>>, %arg1: memref<2x16xf32, #tpu.memory_space<vmem>>, %arg2: memref<32x162xf32, #tpu.memory_space<vmem>>, %arg3: memref<96x96xf32, #tpu.memory_space<vmem>>, %arg4: memref<96x96xf32, #tpu.memory_space<vmem>>, %arg5: memref<5x128xf32, #tpu.memory_space<vmem>>, %arg6: memref<16x48xf32, #tpu.memory_space<vmem>>, %arg7: memref<2x2xf32, #tpu.memory_space<vmem>>) attributes {dimension_semantics = [], scalar_prefetch = 0 : i64, scratch_operands = 0 : i64, tpu.core_type = #tpu.core_type<tc>} {
    %c0 = arith.constant 0 : index
    %c0_0 = arith.constant 0 : index
    %0 = vector.load %arg0[%c0, %c0_0] : memref<16x32xf32, #tpu.memory_space<vmem>>, vector<16x32xf32>
    %c0_1 = arith.constant 0 : index
    %c0_2 = arith.constant 0 : index
    %1 = vector.load %arg2[%c0_1, %c0_2] : memref<32x162xf32, #tpu.memory_space<vmem>>, vector<32x128xf32>
    %cst = arith.constant dense<0.000000e+00> : vector<16x128xf32>
    %2 = tpu.matmul %0, %1, %cst {dimension_numbers = #tpu.dot_dimension_numbers<[1], [0], [0], [1], [0, 0, 1, 1], [], []>} : vector<16x32xf32>, vector<32x128xf32>, vector<16x128xf32> -> vector<16x128xf32>
    %c0_3 = arith.constant 0 : index
    %c0_4 = arith.constant 0 : index
    %3 = vector.load %arg5[%c0_3, %c0_4] : memref<5x128xf32, #tpu.memory_space<vmem>>, vector<1x128xf32>
    %4 = vector.broadcast %3 : vector<1x128xf32> to vector<16x128xf32>
    %5 = arith.addf %2, %4 : vector<16x128xf32>
    %cst_5 = arith.constant 0.000000e+00 : f32
    %6 = vector.broadcast %cst_5 : f32 to vector<16x128xf32>
    %7 = arith.maximumf %5, %6 : vector<16x128xf32>
    %8 = vector.extract_strided_slice %7 {offsets = [0, 0], sizes = [16, 96], strides = [1, 1]} : vector<16x128xf32> to vector<16x96xf32>
    %9 = vector.extract_strided_slice %7 {offsets = [0, 96], sizes = [16, 32], strides = [1, 1]} : vector<16x128xf32> to vector<16x32xf32>
    %c0_6 = arith.constant 0 : index
    %c0_7 = arith.constant 0 : index
    %10 = vector.load %arg3[%c0_6, %c0_7] : memref<96x96xf32, #tpu.memory_space<vmem>>, vector<96x96xf32>
    %cst_8 = arith.constant dense<0.000000e+00> : vector<16x96xf32>
    %11 = tpu.matmul %8, %10, %cst_8 {dimension_numbers = #tpu.dot_dimension_numbers<[1], [0], [0], [1], [0, 0, 1, 1], [], []>} : vector<16x96xf32>, vector<96x96xf32>, vector<16x96xf32> -> vector<16x96xf32>
    %c1 = arith.constant 1 : index
    %c0_9 = arith.constant 0 : index
    %12 = vector.load %arg5[%c1, %c0_9] : memref<5x128xf32, #tpu.memory_space<vmem>>, vector<1x96xf32>
    %13 = vector.broadcast %12 : vector<1x96xf32> to vector<16x96xf32>
    %14 = arith.addf %11, %13 : vector<16x96xf32>
    %cst_10 = arith.constant 0.000000e+00 : f32
    %15 = vector.broadcast %cst_10 : f32 to vector<16x96xf32>
    %16 = arith.maximumf %14, %15 : vector<16x96xf32>
    %c0_11 = arith.constant 0 : index
    %c0_12 = arith.constant 0 : index
    %17 = vector.load %arg4[%c0_11, %c0_12] : memref<96x96xf32, #tpu.memory_space<vmem>>, vector<96x96xf32>
    %cst_13 = arith.constant dense<0.000000e+00> : vector<16x96xf32>
    %18 = tpu.matmul %16, %17, %cst_13 {dimension_numbers = #tpu.dot_dimension_numbers<[1], [0], [0], [1], [0, 0, 1, 1], [], []>} : vector<16x96xf32>, vector<96x96xf32>, vector<16x96xf32> -> vector<16x96xf32>
    %c2 = arith.constant 2 : index
    %c0_14 = arith.constant 0 : index
    %19 = vector.load %arg5[%c2, %c0_14] : memref<5x128xf32, #tpu.memory_space<vmem>>, vector<1x96xf32>
    %20 = vector.broadcast %19 : vector<1x96xf32> to vector<16x96xf32>
    %21 = arith.addf %18, %20 : vector<16x96xf32>
    %c0_15 = arith.constant 0 : index
    %c0_16 = arith.constant 0 : index
    %22 = vector.load %arg1[%c0_15, %c0_16] : memref<2x16xf32, #tpu.memory_space<vmem>>, vector<2x16xf32>
    %cst_17 = arith.constant dense<0.000000e+00> : vector<2x32xf32>
    %23 = tpu.matmul %22, %9, %cst_17 {dimension_numbers = #tpu.dot_dimension_numbers<[1], [0], [0], [1], [0, 0, 1, 1], [], []>} : vector<2x16xf32>, vector<16x32xf32>, vector<2x32xf32> -> vector<2x32xf32>
    %c0_18 = arith.constant 0 : index
    %c128 = arith.constant 128 : index
    %24 = vector.load %arg2[%c0_18, %c128] : memref<32x162xf32, #tpu.memory_space<vmem>>, vector<32x32xf32>
    %cst_19 = arith.constant dense<0.000000e+00> : vector<2x32xf32>
    %25 = tpu.matmul %23, %24, %cst_19 {dimension_numbers = #tpu.dot_dimension_numbers<[1], [0], [0], [1], [0, 0, 1, 1], [], []>} : vector<2x32xf32>, vector<32x32xf32>, vector<2x32xf32> -> vector<2x32xf32>
    %c3 = arith.constant 3 : index
    %c0_20 = arith.constant 0 : index
    %26 = vector.load %arg5[%c3, %c0_20] : memref<5x128xf32, #tpu.memory_space<vmem>>, vector<1x32xf32>
    %27 = vector.broadcast %26 : vector<1x32xf32> to vector<2x32xf32>
    %28 = arith.addf %25, %27 : vector<2x32xf32>
    %cst_21 = arith.constant 0.000000e+00 : f32
    %29 = vector.broadcast %cst_21 : f32 to vector<2x32xf32>
    %30 = arith.maximumf %28, %29 : vector<2x32xf32>
    %c0_22 = arith.constant 0 : index
    %c160 = arith.constant 160 : index
    %31 = vector.load %arg2[%c0_22, %c160] : memref<32x162xf32, #tpu.memory_space<vmem>>, vector<32x2xf32>
    %cst_23 = arith.constant dense<0.000000e+00> : vector<2x2xf32>
    %32 = tpu.matmul %30, %31, %cst_23 {dimension_numbers = #tpu.dot_dimension_numbers<[1], [0], [0], [1], [0, 0, 1, 1], [], []>} : vector<2x32xf32>, vector<32x2xf32>, vector<2x2xf32> -> vector<2x2xf32>
    %c4 = arith.constant 4 : index
    %c0_24 = arith.constant 0 : index
    %33 = vector.load %arg5[%c4, %c0_24] : memref<5x128xf32, #tpu.memory_space<vmem>>, vector<1x2xf32>
    %34 = vector.broadcast %33 : vector<1x2xf32> to vector<2x2xf32>
    %35 = arith.addf %32, %34 : vector<2x2xf32>
    %cst_25 = arith.constant dense<0xFF800000> : vector<2xf32>
    %36 = vector.multi_reduction <maximumf>, %35, %cst_25 [1] : vector<2x2xf32> to vector<2xf32>
    %37 = vector.shape_cast %36 : vector<2xf32> to vector<2x1xf32>
    %38 = vector.broadcast %37 : vector<2x1xf32> to vector<2x2xf32>
    %39 = arith.subf %35, %38 : vector<2x2xf32>
    %40 = math.exp %39 : vector<2x2xf32>
    %cst_26 = arith.constant dense<0.000000e+00> : vector<2xf32>
    %41 = vector.multi_reduction <add>, %40, %cst_26 [1] : vector<2x2xf32> to vector<2xf32>
    %42 = vector.shape_cast %41 : vector<2xf32> to vector<2x1xf32>
    %43 = math.log %42 : vector<2x1xf32>
    %44 = vector.broadcast %43 : vector<2x1xf32> to vector<2x2xf32>
    %45 = arith.subf %39, %44 : vector<2x2xf32>
    %c0_27 = arith.constant 0 : index
    %c0_28 = arith.constant 0 : index
    %46 = vector.load %arg7[%c0_27, %c0_28] : memref<2x2xf32, #tpu.memory_space<vmem>>, vector<2x2xf32>
    tpu.vector_store %arg7[%c0_27, %c0_28], %45 {strides = array<i32>} : memref<2x2xf32, #tpu.memory_space<vmem>>, vector<2x2xf32>,
    %47 = vector.extract_strided_slice %16 {offsets = [0, 0], sizes = [16, 16], strides = [1, 1]} : vector<16x96xf32> to vector<16x16xf32>
    %48 = vector.extract_strided_slice %21 {offsets = [0, 0], sizes = [16, 16], strides = [1, 1]} : vector<16x96xf32> to vector<16x16xf32>
    %cst_29 = arith.constant dense<0.000000e+00> : vector<16x16xf32>
    %49 = tpu.matmul %47, %48, %cst_29 {dimension_numbers = #tpu.dot_dimension_numbers<[1], [1], [0], [0], [0, 0, 1, 0], [], []>} : vector<16x16xf32>, vector<16x16xf32>, vector<16x16xf32> -> vector<16x16xf32>
    %cst_30 = arith.constant dense<0.000000e+00> : vector<16x16xf32>
    %50 = tpu.matmul %48, %47, %cst_30 {dimension_numbers = #tpu.dot_dimension_numbers<[1], [1], [0], [0], [0, 0, 1, 0], [], []>} : vector<16x16xf32>, vector<16x16xf32>, vector<16x16xf32> -> vector<16x16xf32>
    %51 = arith.addf %49, %50 : vector<16x16xf32>
    %cst_31 = arith.constant 5.000000e-01 : f32
    %52 = vector.broadcast %cst_31 : f32 to vector<16x16xf32>
    %53 = arith.mulf %52, %51 : vector<16x16xf32>
    %54 = vector.extract_strided_slice %16 {offsets = [0, 16], sizes = [16, 16], strides = [1, 1]} : vector<16x96xf32> to vector<16x16xf32>
    %55 = vector.extract_strided_slice %21 {offsets = [0, 16], sizes = [16, 16], strides = [1, 1]} : vector<16x96xf32> to vector<16x16xf32>
    %cst_32 = arith.constant dense<0.000000e+00> : vector<16x16xf32>
    %56 = tpu.matmul %54, %55, %cst_32 {dimension_numbers = #tpu.dot_dimension_numbers<[1], [1], [0], [0], [0, 0, 1, 0], [], []>} : vector<16x16xf32>, vector<16x16xf32>, vector<16x16xf32> -> vector<16x16xf32>
    %cst_33 = arith.constant dense<0.000000e+00> : vector<16x16xf32>
    %57 = tpu.matmul %55, %54, %cst_33 {dimension_numbers = #tpu.dot_dimension_numbers<[1], [1], [0], [0], [0, 0, 1, 0], [], []>} : vector<16x16xf32>, vector<16x16xf32>, vector<16x16xf32> -> vector<16x16xf32>
    %58 = arith.addf %56, %57 : vector<16x16xf32>
    %cst_34 = arith.constant 5.000000e-01 : f32
    %59 = vector.broadcast %cst_34 : f32 to vector<16x16xf32>
    %60 = arith.mulf %59, %58 : vector<16x16xf32>
    %61 = vector.extract_strided_slice %16 {offsets = [0, 32], sizes = [16, 16], strides = [1, 1]} : vector<16x96xf32> to vector<16x16xf32>
    %62 = vector.extract_strided_slice %21 {offsets = [0, 32], sizes = [16, 16], strides = [1, 1]} : vector<16x96xf32> to vector<16x16xf32>
    %cst_35 = arith.constant dense<0.000000e+00> : vector<16x16xf32>
    %63 = tpu.matmul %61, %62, %cst_35 {dimension_numbers = #tpu.dot_dimension_numbers<[1], [1], [0], [0], [0, 0, 1, 0], [], []>} : vector<16x16xf32>, vector<16x16xf32>, vector<16x16xf32> -> vector<16x16xf32>
    %cst_36 = arith.constant dense<0.000000e+00> : vector<16x16xf32>
    %64 = tpu.matmul %62, %61, %cst_36 {dimension_numbers = #tpu.dot_dimension_numbers<[1], [1], [0], [0], [0, 0, 1, 0], [], []>} : vector<16x16xf32>, vector<16x16xf32>, vector<16x16xf32> -> vector<16x16xf32>
    %65 = arith.addf %63, %64 : vector<16x16xf32>
    %cst_37 = arith.constant 5.000000e-01 : f32
    %66 = vector.broadcast %cst_37 : f32 to vector<16x16xf32>
    %67 = arith.mulf %66, %65 : vector<16x16xf32>
    %68 = vector.extract_strided_slice %16 {offsets = [0, 48], sizes = [16, 16], strides = [1, 1]} : vector<16x96xf32> to vector<16x16xf32>
    %69 = vector.extract_strided_slice %21 {offsets = [0, 48], sizes = [16, 16], strides = [1, 1]} : vector<16x96xf32> to vector<16x16xf32>
    %cst_38 = arith.constant dense<0.000000e+00> : vector<16x16xf32>
    %70 = tpu.matmul %68, %69, %cst_38 {dimension_numbers = #tpu.dot_dimension_numbers<[1], [1], [0], [0], [0, 0, 1, 0], [], []>} : vector<16x16xf32>, vector<16x16xf32>, vector<16x16xf32> -> vector<16x16xf32>
    %cst_39 = arith.constant dense<0.000000e+00> : vector<16x16xf32>
    %71 = tpu.matmul %69, %68, %cst_39 {dimension_numbers = #tpu.dot_dimension_numbers<[1], [1], [0], [0], [0, 0, 1, 0], [], []>} : vector<16x16xf32>, vector<16x16xf32>, vector<16x16xf32> -> vector<16x16xf32>
    %72 = arith.addf %70, %71 : vector<16x16xf32>
    %cst_40 = arith.constant 5.000000e-01 : f32
    %73 = vector.broadcast %cst_40 : f32 to vector<16x16xf32>
    %74 = arith.mulf %73, %72 : vector<16x16xf32>
    %75 = vector.extract_strided_slice %16 {offsets = [0, 64], sizes = [16, 16], strides = [1, 1]} : vector<16x96xf32> to vector<16x16xf32>
    %76 = vector.extract_strided_slice %21 {offsets = [0, 64], sizes = [16, 16], strides = [1, 1]} : vector<16x96xf32> to vector<16x16xf32>
    %cst_41 = arith.constant dense<0.000000e+00> : vector<16x16xf32>
    %77 = tpu.matmul %75, %76, %cst_41 {dimension_numbers = #tpu.dot_dimension_numbers<[1], [1], [0], [0], [0, 0, 1, 0], [], []>} : vector<16x16xf32>, vector<16x16xf32>, vector<16x16xf32> -> vector<16x16xf32>
    %cst_42 = arith.constant dense<0.000000e+00> : vector<16x16xf32>
    %78 = tpu.matmul %76, %75, %cst_42 {dimension_numbers = #tpu.dot_dimension_numbers<[1], [1], [0], [0], [0, 0, 1, 0], [], []>} : vector<16x16xf32>, vector<16x16xf32>, vector<16x16xf32> -> vector<16x16xf32>
    %79 = arith.addf %77, %78 : vector<16x16xf32>
    %cst_43 = arith.constant 5.000000e-01 : f32
    %80 = vector.broadcast %cst_43 : f32 to vector<16x16xf32>
    %81 = arith.mulf %80, %79 : vector<16x16xf32>
    %82 = vector.extract_strided_slice %16 {offsets = [0, 80], sizes = [16, 16], strides = [1, 1]} : vector<16x96xf32> to vector<16x16xf32>
    %83 = vector.extract_strided_slice %21 {offsets = [0, 80], sizes = [16, 16], strides = [1, 1]} : vector<16x96xf32> to vector<16x16xf32>
    %cst_44 = arith.constant dense<0.000000e+00> : vector<16x16xf32>
    %84 = tpu.matmul %82, %83, %cst_44 {dimension_numbers = #tpu.dot_dimension_numbers<[1], [1], [0], [0], [0, 0, 1, 0], [], []>} : vector<16x16xf32>, vector<16x16xf32>, vector<16x16xf32> -> vector<16x16xf32>
    %cst_45 = arith.constant dense<0.000000e+00> : vector<16x16xf32>
    %85 = tpu.matmul %83, %82, %cst_45 {dimension_numbers = #tpu.dot_dimension_numbers<[1], [1], [0], [0], [0, 0, 1, 0], [], []>} : vector<16x16xf32>, vector<16x16xf32>, vector<16x16xf32> -> vector<16x16xf32>
    %86 = arith.addf %84, %85 : vector<16x16xf32>
    %cst_46 = arith.constant 5.000000e-01 : f32
    %87 = vector.broadcast %cst_46 : f32 to vector<16x16xf32>
    %88 = arith.mulf %87, %86 : vector<16x16xf32>
    %89 = vector.extract_strided_slice %53 {offsets = [0, 0], sizes = [8, 8], strides = [1, 1]} : vector<16x16xf32> to vector<8x8xf32>
    %90 = vector.extract_strided_slice %60 {offsets = [0, 0], sizes = [8, 8], strides = [1, 1]} : vector<16x16xf32> to vector<8x8xf32>
    %91 = vector.extract_strided_slice %67 {offsets = [0, 0], sizes = [8, 8], strides = [1, 1]} : vector<16x16xf32> to vector<8x8xf32>
    %92 = arith.maximumf %89, %90 : vector<8x8xf32>
    %93 = arith.maximumf %92, %91 : vector<8x8xf32>
    %94 = arith.subf %89, %93 : vector<8x8xf32>
    %95 = math.exp %94 : vector<8x8xf32>
    %96 = arith.subf %90, %93 : vector<8x8xf32>
    %97 = math.exp %96 : vector<8x8xf32>
    %98 = arith.addf %95, %97 : vector<8x8xf32>
    %99 = arith.subf %91, %93 : vector<8x8xf32>
    %100 = math.exp %99 : vector<8x8xf32>
    %101 = arith.addf %98, %100 : vector<8x8xf32>
    %102 = math.log %101 : vector<8x8xf32>
    %103 = arith.addf %93, %102 : vector<8x8xf32>
    %104 = arith.subf %89, %103 : vector<8x8xf32>
    %105 = arith.subf %90, %103 : vector<8x8xf32>
    %106 = arith.subf %91, %103 : vector<8x8xf32>
    %107 = vector.extract_strided_slice %74 {offsets = [0, 0], sizes = [8, 8], strides = [1, 1]} : vector<16x16xf32> to vector<8x8xf32>
    %108 = vector.extract_strided_slice %81 {offsets = [0, 0], sizes = [8, 8], strides = [1, 1]} : vector<16x16xf32> to vector<8x8xf32>
    %109 = vector.extract_strided_slice %88 {offsets = [0, 0], sizes = [8, 8], strides = [1, 1]} : vector<16x16xf32> to vector<8x8xf32>
    %110 = arith.maximumf %107, %108 : vector<8x8xf32>
    %111 = arith.maximumf %110, %109 : vector<8x8xf32>
    %112 = arith.subf %107, %111 : vector<8x8xf32>
    %113 = math.exp %112 : vector<8x8xf32>
    %114 = arith.subf %108, %111 : vector<8x8xf32>
    %115 = math.exp %114 : vector<8x8xf32>
    %116 = arith.addf %113, %115 : vector<8x8xf32>
    %117 = arith.subf %109, %111 : vector<8x8xf32>
    %118 = math.exp %117 : vector<8x8xf32>
    %119 = arith.addf %116, %118 : vector<8x8xf32>
    %120 = math.log %119 : vector<8x8xf32>
    %121 = arith.addf %111, %120 : vector<8x8xf32>
    %122 = arith.subf %107, %121 : vector<8x8xf32>
    %123 = arith.subf %108, %121 : vector<8x8xf32>
    %124 = arith.subf %109, %121 : vector<8x8xf32>
    %125 = tpu.concatenate %104, %105, %106, %122, %123, %124 in 1 : vector<8x8xf32>, vector<8x8xf32>, vector<8x8xf32>, vector<8x8xf32>, vector<8x8xf32>, vector<8x8xf32> -> vector<8x48xf32>
    %126 = vector.extract_strided_slice %53 {offsets = [8, 8], sizes = [8, 8], strides = [1, 1]} : vector<16x16xf32> to vector<8x8xf32>
    %127 = vector.extract_strided_slice %60 {offsets = [8, 8], sizes = [8, 8], strides = [1, 1]} : vector<16x16xf32> to vector<8x8xf32>
    %128 = vector.extract_strided_slice %67 {offsets = [8, 8], sizes = [8, 8], strides = [1, 1]} : vector<16x16xf32> to vector<8x8xf32>
    %129 = arith.maximumf %126, %127 : vector<8x8xf32>
    %130 = arith.maximumf %129, %128 : vector<8x8xf32>
    %131 = arith.subf %126, %130 : vector<8x8xf32>
    %132 = math.exp %131 : vector<8x8xf32>
    %133 = arith.subf %127, %130 : vector<8x8xf32>
    %134 = math.exp %133 : vector<8x8xf32>
    %135 = arith.addf %132, %134 : vector<8x8xf32>
    %136 = arith.subf %128, %130 : vector<8x8xf32>
    %137 = math.exp %136 : vector<8x8xf32>
    %138 = arith.addf %135, %137 : vector<8x8xf32>
    %139 = math.log %138 : vector<8x8xf32>
    %140 = arith.addf %130, %139 : vector<8x8xf32>
    %141 = arith.subf %126, %140 : vector<8x8xf32>
    %142 = arith.subf %127, %140 : vector<8x8xf32>
    %143 = arith.subf %128, %140 : vector<8x8xf32>
    %144 = vector.extract_strided_slice %74 {offsets = [8, 8], sizes = [8, 8], strides = [1, 1]} : vector<16x16xf32> to vector<8x8xf32>
    %145 = vector.extract_strided_slice %81 {offsets = [8, 8], sizes = [8, 8], strides = [1, 1]} : vector<16x16xf32> to vector<8x8xf32>
    %146 = vector.extract_strided_slice %88 {offsets = [8, 8], sizes = [8, 8], strides = [1, 1]} : vector<16x16xf32> to vector<8x8xf32>
    %147 = arith.maximumf %144, %145 : vector<8x8xf32>
    %148 = arith.maximumf %147, %146 : vector<8x8xf32>
    %149 = arith.subf %144, %148 : vector<8x8xf32>
    %150 = math.exp %149 : vector<8x8xf32>
    %151 = arith.subf %145, %148 : vector<8x8xf32>
    %152 = math.exp %151 : vector<8x8xf32>
    %153 = arith.addf %150, %152 : vector<8x8xf32>
    %154 = arith.subf %146, %148 : vector<8x8xf32>
    %155 = math.exp %154 : vector<8x8xf32>
    %156 = arith.addf %153, %155 : vector<8x8xf32>
    %157 = math.log %156 : vector<8x8xf32>
    %158 = arith.addf %148, %157 : vector<8x8xf32>
    %159 = arith.subf %144, %158 : vector<8x8xf32>
    %160 = arith.subf %145, %158 : vector<8x8xf32>
    %161 = arith.subf %146, %158 : vector<8x8xf32>
    %162 = tpu.concatenate %141, %142, %143, %159, %160, %161 in 1 : vector<8x8xf32>, vector<8x8xf32>, vector<8x8xf32>, vector<8x8xf32>, vector<8x8xf32>, vector<8x8xf32> -> vector<8x48xf32>
    %163 = tpu.concatenate %125, %162 in 0 : vector<8x48xf32>, vector<8x48xf32> -> vector<16x48xf32>
    %c0_47 = arith.constant 0 : index
    %c0_48 = arith.constant 0 : index
    %164 = vector.load %arg6[%c0_47, %c0_48] : memref<16x48xf32, #tpu.memory_space<vmem>>, vector<16x48xf32>
    tpu.vector_store %arg6[%c0_47, %c0_48], %163 {strides = array<i32>} : memref<16x48xf32, #tpu.memory_space<vmem>>, vector<16x48xf32>,
    return
  }
}

</mosaic_0001>

<bundles_post_ra>
// kernel: edge_predictor_forward.1
= control target key start
LH: loop header
LB: loop body
LE: loop exit
PB: predicated region body
PF: predicated region fallthrough
CT: control target
= control target key end

     0   :  { %13 = vsyncpa [#allocation3], 0  ;;  %s1380_s0 = inlined_call_operand.vmem [shape: f32[16,32], index: 0, kind: input, shape index: {}]   ;;  %s1381_s1 = inlined_call_operand.vmem [shape: f32[2,16], index: 1, kind: input, shape index: {}]   ;;  %s1382_s2 = inlined_call_operand.hbm [shape: f32[32,162], index: 2, kind: input, shape index: {}]   ;;  %s1383_s3 = inlined_call_operand.hbm [shape: f32[96,96], index: 3, kind: input, shape index: {}]   ;;  %s1384_s4 = inlined_call_operand.hbm [shape: f32[96,96], index: 4, kind: input, shape index: {}]   ;;  %s1385_s5 = inlined_call_operand.vmem [shape: f32[5,128], index: 5, kind: input, shape index: {}]   ;;  %s1386_s6 = inlined_call_operand.vmem [shape: f32[16,48], index: 6, kind: output, shape index: {0}]   ;;  %s1387_s7 = inlined_call_operand.hbm [shape: f32[2,2], index: 7, kind: output, shape index: {1}]  }
   0x1   :  { %14 = vsyncpa [#allocation6], 0  ;;  %s37_s26 = sshll.u32 %s1383_s3, 4  ;;  %s38_s26 = int_to_ptr.hbm [resolvable:$true] %s37_s26 }
   0x2   :  { %15 = vsyncpa [#allocation4], 0  ;;  %s1084_s27 = smov [#allocation5]   ;;  %s24_s8 = sshll.u32 %s1382_s2, 4  ;;  %s25_s8 = int_to_ptr.hbm [resolvable:$true] %s24_s8 }
   0x3   :  { %s39_s28 = sshll.u32 %s1084_s27, 4  ;;  %s1085_s9 = smov 128   ;;  %s40_s28 = int_to_ptr.vmem [resolvable:$true] %s39_s28 }
   0x4   :  { %s1086_s10 = smov 8   ;;  %s1087_s11 = smov [#allocation2]  }
   0x5   :  { %45 = dma.hbm_to_vmem [thread:$0]  %s38_s26, 1536, %s40_s28, [#allocation6], %s1085_s9, %s1085_s9, %s1086_s10  }
   0x6   :  { %s26_s12 = sshll.u32 %s1087_s11, 4  ;;  %s1088_s13 = smov 256   ;;  %s27_s12 = int_to_ptr.vmem [resolvable:$true] %s26_s12 }
   0x7   :  { %s1089_s14 = smov 16   ;;  %s50_s16 = sshll.u32 %s1384_s4, 4  ;;  %s51_s16 = int_to_ptr.hbm [resolvable:$true] %s50_s16 }
   0x8   :  { %32 = dma.hbm_to_vmem [thread:$0]  %s25_s8, 1024, %s27_s12, [#allocation3], %s1088_s13, %s1088_s13, %s1089_s14  }
   0x9   :  { %s1090_s17 = smov [#allocation7]  }
   0xa   :  { %s52_s18 = sshll.u32 %s1090_s17, 4  ;;  %s53_s18 = int_to_ptr.vmem [resolvable:$true] %s52_s18 }
   0xb   :  { %58 = dma.hbm_to_vmem [thread:$0]  %s51_s16, 1536, %s53_s18, [#allocation6], %s1085_s9, %s1085_s9, %s1086_s10  }
   0xc   :  { %1078 = dma.done.wait [#allocation3], 1024  }
   0xd   :  { %1079 = vsyncadd [#allocation3], 4294966272 }
   0xe   :  { %1080 = dma.done.wait [#allocation6], 3072  }
   0xf   :  { %1081 = vsyncadd [#allocation6], 4294964224  ;;  %v78_v0 = vld [vmem:[#allocation2 + $0x30] sm:$0xff]  ;;  %v77_v1 = vld [vmem:[#allocation2 + $0x20] sm:$0xff]  ;;  %vm81_vm0 = vcmask 261120   ;;  %vm127_vm1 = vcmask 785408  }
  0x10   :  { %100 = vmatpush.msra.mxu2 %v78_v0  ;;  %v76_v2 = vld [vmem:[#allocation2 + $0x10] sm:$0xff]  ;;  %v124_v3 = vld [vmem:[#allocation5 + $0x58] sm:$0xff]  ;;  %v75_v5 = vld [vmem:[#allocation2] sm:$0xff]  ;;  %s1091_s22 = smov 32   ;;  %s1092_s23 = smov 96   ;;  %vm209_vm2 = vcmask 130048  }
  0x11   :  { %v123_v4 = vld [vmem:[#allocation5 + $0x50] sm:$0xff]  ;;  %138 = vmatpush.msra.mxu1 %v124_v3  ;;  %v73_v6 = vld [vmem:[%s1380_s0] sm:$0xff]  ;;  %v122_v7 = vld [vmem:[#allocation5 + $0x48] sm:$0xff]  ;;  %s1093_s28 = smov 112   ;;  %s1094_s30 = smov 80   ;;  %vm304_vm3 = vcmask 9216  }
  0x12   :  { %101 = vmatpush.msra.mxu2 %v77_v1  ;;  %v121_v8 = vld [vmem:[#allocation5 + $0x40] sm:$0xff]  ;;  %v120_v9 = vld [vmem:[#allocation5 + $0x38] sm:$0xff]  ;;  %v119_v10 = vld [vmem:[#allocation5 + $0x30] sm:$0xff]  ;;  %s1095_s8 = smov 64   ;;  %s1096_s9 = smov 48   ;;  %vm754_vm4 = vcmask 64512  }
  0x13   :  { %139 = vmatpush.msra.mxu1 %v123_v4  ;;  %v118_v11 = vld [vmem:[#allocation5 + $0x28] sm:$0xff]  ;;  %v117_v13 = vld [vmem:[#allocation5 + $0x20] sm:$0xff]  ;;  %v116_v14 = vld [vmem:[#allocation5 + $0x18] sm:$0xff]  ;;  %s1098_s15 = smov 24   ;;  %s1099_s16 = smov 40   ;;  %vm757_vm5 = vcmask 195584  }
  0x14   :  { %102 = vmatpush.msra.mxu2 %v76_v2  ;;  %v74_v12 = vld [vmem:[%s1380_s0 + $0x8] sm:$0xff]  ;;  %v115_v15 = vld [vmem:[#allocation5 + $0x10] sm:$0xff]  ;;  %v113_v17 = vld [vmem:[#allocation5] sm:$0xff]  ;;  %vm760_vm6 = vcmask 326656   ;;  %vm825_vm7 = vcmask 392192   ;;  %s1100_s17 = smov [#allocation8]  }
  0x15   :  { %140 = vmatpush.msra.mxu1 %v122_v7  ;;  %v114_v16 = vld [vmem:[#allocation5 + $0x8] sm:$0xff]  ;;  %v170_v18 = vld [vmem:[#allocation7 + $0x58] sm:$0xff]  ;;  %v169_v19 = vld [vmem:[#allocation7 + $0x50] sm:$0xff]  ;;  %s835_s18 = sshll.u32 %s1100_s17, 4  ;;  %s837_s19 = sshll.u32 %s1387_s7, 4  ;;  %s836_s18 = int_to_ptr.vmem [resolvable:$true] %s835_s18  ;;  %s838_s19 = int_to_ptr.hbm [resolvable:$true] %s837_s19 }
  0x16   :  { %103 = vmatpush.msra.mxu2 %v75_v5  ;;  %v168_v20 = vld [vmem:[#allocation7 + $0x48] sm:$0xff]  ;;  %v167_v21 = vld [vmem:[#allocation7 + $0x40] sm:$0xff]  ;;  %v166_v22 = vld [vmem:[#allocation7 + $0x38] sm:$0xff] }
  0x17   :  { %850 = vmatmul.msk.f32.vlgmr.msra.gmra.mxu2 %vm81_vm0, %v73_v6  ;;  %141 = vmatpush.msra.mxu1 %v121_v8  ;;  %v165_v23 = vld [vmem:[#allocation7 + $0x30] sm:$0xff]  ;;  %v164_v24 = vld [vmem:[#allocation7 + $0x28] sm:$0xff]  ;;  %v163_v25 = vld [vmem:[#allocation7 + $0x20] sm:$0xff] }
  0x18   :  { %183 = vmatpush.msrb.mxu2 %v170_v18  ;;  %v941_v26 = vld [vmem:[%s1385_s5] ss:$0 sm:$0xff]  ;;  %v162_v27 = vld [vmem:[#allocation7 + $0x18] sm:$0xff]  ;;  %v161_v35 = vld [vmem:[#allocation7 + $0x10] sm:$0xff] }
  0x19   :  { %142 = vmatpush.msra.mxu1 %v120_v9  ;;  %v160_v36 = vld [vmem:[#allocation7 + $0x8] sm:$0xff]  ;;  %v234_v38 = vld [vmem:[#allocation2 + $0x18] sm:$0xff]  ;;  %v159_v39 = vld [vmem:[#allocation7] sm:$0xff] }
  0x1a   :  { %184 = vmatpush.msrb.mxu2 %v169_v19  ;;  %v233_v37 = vld [vmem:[#allocation2 + $0x8] sm:$0xff]  ;;  %v236_v42 = vld [vmem:[#allocation2 + $0x38] sm:$0xff]  ;;  %v942_v44 = vld [vmem:[%s1385_s5 + $0x1] ss:$0 sm:$0xff] }
  0x1b   :  { %143 = vmatpush.msra.mxu1 %v119_v10  ;;  %v936_v40 = vpack.i.bf16 %v233_v37, %v234_v38  ;;  %v235_v41 = vld [vmem:[#allocation2 + $0x28] sm:$0xff]  ;;  %v202_v50 = vld [vmem:[%s1381_s1] sm:$0x3]  ;;  %v943_v63 = vld [vmem:[%s1385_s5 + $0x2] ss:$0 sm:$0xff] }
  0x1c   :  { %185 = vmatpush.msrb.mxu2 %v168_v20  ;;  %v931_v43 = vpack.i.bf16 %v235_v41, %v236_v42 }
  0x1d   :  { %144 = vmatpush.msra.mxu1 %v118_v11  ;;  %937 = vrot.lane.b32.xlu1 %v936_v40, %s1092_s23 }
  0x1e   :  { %186 = vmatpush.msrb.mxu2 %v167_v21 }
  0x1f   :  { %851 = vmatmul.msk.f32.gmra.mxu2 %vm81_vm0, %v74_v12  ;;  %145 = vmatpush.msra.mxu1 %v117_v13  ;;  %v944_v13 = vld [vmem:[%s1385_s5 + $0x3] ss:$0 sm:$0xff] }
  0x20   :  { %187 = vmatpush.msrb.mxu2 %v166_v22 }
  0x21   :  { %146 = vmatpush.msra.mxu1 %v116_v14 }
  0x22   :  { %188 = vmatpush.msrb.mxu2 %v165_v23 }
  0x23   :  { %147 = vmatpush.msra.mxu1 %v115_v15 }
  0x24   :  { %189 = vmatpush.msrb.mxu2 %v164_v24 }
  0x25   :  { %148 = vmatpush.msra.mxu1 %v114_v16 }
  0x26   :  { %190 = vmatpush.msrb.mxu2 %v163_v25 }
  0x27   :  { %149 = vmatpush.msra.mxu1 %v113_v17 }
  0x28   :  { %191 = vmatpush.msrb.mxu2 %v162_v27 }
  0x2a   :  { %192 = vmatpush.msrb.mxu2 %v161_v35 }
  0x2c   :  { %193 = vmatpush.msrb.mxu2 %v160_v36 }
  0x2e   :  { %194 = vmatpush.msrb.mxu2 %v159_v39 }
  0x8f   :  { %v938_v58 = vpop.permute.xlu1 %937 }
  0x90   :  { %v939_v59 = vunpack.i.l.bf16 %v938_v58  ;;  %v940_v60 = vunpack.i.h.bf16 %v938_v58 }
  0x9a   :  { %v105_v28 = vpop.f32.mrf.mxu2 }
  0x9b   :  { %v106_v29 = vadd.f32 %v941_v26, %v105_v28 }
  0x9d   :  { %v111_v30 = vmax.f32 %v106_v29, 0.0 }
  0x9f   :  { %852 = vmatmul.msk.f32.vlgmr.msra.gmra.mxu1 %vm127_vm1, %v111_v30 }
  0xa2   :  { %v108_v31 = vpop.f32.mrf.mxu2 }
  0xa3   :  { %v109_v32 = vadd.f32 %v941_v26, %v108_v31 }
  0xa5   :  { %v112_v33 = vmax.f32 %v109_v32, 0.0 }
  0xa7   :  { %853 = vmatmul.msk.f32.gmra.mxu1 %vm127_vm1, %v112_v33  ;;  %v926_v34 = vpack.i.bf16 %v111_v30, %v112_v33  ;;  %v945_v30 = vld [vmem:[%s1385_s5 + $0x4] ss:$0 sm:$0xff]  ;;  %s1097_s5 = smov 120  }
  0xa9   :  { %927 = vrot.lane.b32.xlu0 %v926_v34, %s1091_s22 }
  0xb1   :  { %932 = vrot.lane.b32.xlu0 %v931_v43, %s1092_s23 }
 0x11b   :  { %v928_v45 = vpop.permute.xlu0 %927 }
 0x11c   :  { %v151_v46 = vpop.f32.mrf.mxu1  ;;  %v929_v47 = vunpack.i.l.bf16 %v928_v45  ;;  %v930_v49 = vunpack.i.h.bf16 %v928_v45 }
 0x11d   :  { %v152_v48 = vadd.f32 %v942_v44, %v151_v46 }
 0x11e   :  { %227 = vmatpush.msra.mxu3 %v929_v47 }
 0x11f   :  { %v1175_v51 = vmax.f32 %v152_v48, 0.0 }
 0x120   :  { %228 = vmatpush.msra.mxu3 %v930_v49 }
 0x121   :  { %856 = vmatmul.msk.f32.vlgmr.msra.gmra.mxu3 %vm209_vm2, %v202_v50  ;;  %380 = vrot.lane.b32.xlu2 %v1175_v51, %s1093_s28 }
 0x122   :  { %854 = vmatmul.msk.f32.vlgmr.msrb.gmra.mxu2 %vm127_vm1, %v1175_v51  ;;  %254 = vmatpush.msrb.mxu3 %v236_v42 }
 0x123   :  { %v933_v55 = vpop.permute.xlu0 %932 }
 0x124   :  { %v154_v52 = vpop.f32.mrf.mxu1  ;;  %255 = vmatpush.msrb.mxu3 %v235_v41  ;;  %v935_v56 = vunpack.i.h.bf16 %v933_v55  ;;  %v934_v57 = vunpack.i.l.bf16 %v933_v55 }
 0x125   :  { %v155_v53 = vadd.f32 %v942_v44, %v154_v52 }
 0x126   :  { %256 = vmatpush.msrb.mxu3 %v234_v38 }
 0x127   :  { %v1182_v54 = vmax.f32 %v155_v53, 0.0 }
 0x128   :  { %257 = vmatpush.msrb.mxu3 %v233_v37 }
 0x129   :  { %382 = vrot.lane.b32.xlu1 %v1182_v54, %s1093_s28  ;;  %859 = vmatpush.xpose.msk.msra.mxu0 %vm209_vm2, %v1182_v54 }
 0x12a   :  { %855 = vmatmul.msk.f32.gmra.mxu2 %vm127_vm1, %v1182_v54  ;;  %296 = vmatpush.msra.mxu3 %v934_v57 }
 0x12c   :  { %297 = vmatpush.msra.mxu3 %v935_v56 }
 0x12d   :  { %860 = vmatpush.xpose.msk.msra.mxu0 %vm209_vm2, %v1175_v51 }
 0x12e   :  { %298 = vmatpush.msra.mxu3 %v939_v59 }
 0x130   :  { %299 = vmatpush.msra.mxu3 %v940_v60 }
 0x131   :  { %444 = vrot.lane.b32.xlu1 %v1175_v51, %s1092_s23 }
 0x17b   :  { %v381_v62 = vpop.permute.xlu2 %380 }
 0x19b   :  { %v383_v61 = vpop.permute.xlu1 %382 }
 0x19c   :  { %867 = vmatpush.xpose.msk.msrb.mxu0 %vm209_vm2, %v383_v61 }
 0x1a0   :  { %868 = vmatpush.xpose.msk.msrb.mxu0 %vm209_vm2, %v381_v62 }
 0x1a3   :  { %v445_v7 = vpop.permute.xlu1 %444 }
 0x1a4   :  { %v230_v0 = vpop.f32.mrf.mxu3 }
 0x1a5   :  { %v196_v1 = vpop.f32.mrf.mxu2  ;;  %857 = vmatmul.msk.f32.vlgmr.msrb.gmra.mxu3 %vm81_vm0, %v230_v0 }
 0x1a6   :  { %v197_v2 = vadd.f32 %v943_v63, %v196_v1 }
 0x1a8   :  { %440 = vrot.lane.b32.xlu0 %v197_v2, %s1092_s23  ;;  %376 = vrot.lane.b32.xlu2 %v197_v2, %s1093_s28 }
 0x1a9   :  { %861 = vmatmul.msk.f32.vlgmr.msra.gmra.mxu0 %vm209_vm2, %v197_v2 }
 0x1ad   :  { %v199_v3 = vpop.f32.mrf.mxu2 }
 0x1ae   :  { %v200_v4 = vadd.f32 %v943_v63, %v199_v3 }
 0x1b0   :  { %442 = vrot.lane.b32.xlu1 %v200_v4, %s1092_s23  ;;  %863 = vmatpush.xpose.msk.msrb.mxu3 %vm209_vm2, %v200_v4 }
 0x1b1   :  { %378 = vrot.lane.b32.xlu0 %v200_v4, %s1093_s28  ;;  %446 = vrot.lane.b32.xlu2 %v1182_v54, %s1092_s23 }
 0x1b2   :  { %862 = vmatmul.msk.f32.gmra.mxu0 %vm209_vm2, %v200_v4 }
 0x1b4   :  { %864 = vmatpush.xpose.msk.msrb.mxu3 %vm209_vm2, %v197_v2 }
 0x1b8   :  { %504 = vrot.lane.b32.xlu1 %v197_v2, %s1094_s30 }
 0x1b9   :  { %510 = vrot.lane.b32.xlu0 %v1182_v54, %s1094_s30  ;;  %508 = vrot.lane.b32.xlu2 %v1175_v51, %s1094_s30 }
 0x1c0   :  { %574 = vrot.lane.b32.xlu1 %v1182_v54, %s1095_s8 }
 0x1c1   :  { %570 = vrot.lane.b32.xlu0 %v200_v4, %s1095_s8  ;;  %506 = vrot.lane.b32.xlu2 %v200_v4, %s1094_s30 }
 0x1c8   :  { %634 = vrot.lane.b32.xlu1 %v200_v4, %s1096_s9 }
 0x1c9   :  { %572 = vrot.lane.b32.xlu0 %v1175_v51, %s1095_s8  ;;  %568 = vrot.lane.b32.xlu2 %v197_v2, %s1095_s8 }
 0x1d0   :  { %636 = vrot.lane.b32.xlu1 %v1175_v51, %s1096_s9 }
 0x1d1   :  { %632 = vrot.lane.b32.xlu0 %v197_v2, %s1096_s9  ;;  %638 = vrot.lane.b32.xlu2 %v1182_v54, %s1096_s9 }
 0x202   :  { %v377_v5 = vpop.permute.xlu2 %376 }
 0x203   :  { %869 = vmatmul.msk.f32.vlgmr.msrb.gmra.mxu0 %vm209_vm2, %v377_v5 }
 0x20b   :  { %v447_v6 = vpop.permute.xlu2 %446 }
 0x20c   :  { %875 = vmatpush.xpose.msk.msra.mxu2 %vm209_vm2, %v447_v6 }
 0x210   :  { %876 = vmatpush.xpose.msk.msra.mxu2 %vm209_vm2, %v445_v7 }
 0x213   :  { %v509_v8 = vpop.permute.xlu2 %508 }
 0x21a   :  { %v441_v9 = vpop.permute.xlu0 %440 }
 0x21b   :  { %877 = vmatmul.msk.f32.vlgmr.msra.gmra.mxu2 %vm209_vm2, %v441_v9  ;;  %v507_v10 = vpop.permute.xlu2 %506 }
 0x222   :  { %v443_v11 = vpop.permute.xlu1 %442 }
 0x223   :  { %v379_v12 = vpop.permute.xlu0 %378  ;;  %878 = vmatmul.msk.f32.gmra.mxu2 %vm209_vm2, %v443_v11  ;;  %v569_v14 = vpop.permute.xlu2 %568 }
 0x224   :  { %870 = vmatmul.msk.f32.gmra.mxu0 %vm209_vm2, %v379_v12  ;;  %907 = vmatpush.xpose.msk.msrb.mxu1 %vm209_vm2, %v379_v12 }
 0x225   :  { %871 = vmatpush.xpose.msk.msra.mxu0 %vm209_vm2, %v379_v12 }
 0x226   :  { %v345_v27 = vpop.f32.mrf.mxu0 }
 0x228   :  { %908 = vmatpush.xpose.msk.msrb.mxu1 %vm209_vm2, %v377_v5  ;;  %v259_v15 = vpop.f32.mrf.mxu3 }
 0x229   :  { %872 = vmatpush.xpose.msk.msra.mxu0 %vm209_vm2, %v377_v5  ;;  %v260_v16 = vadd.f32 %v944_v13, %v259_v15 }
 0x22a   :  { %v505_v17 = vpop.permute.xlu1 %504 }
 0x22b   :  { %v262_v18 = vmax.f32 %v260_v16, 0.0  ;;  %v511_v19 = vpop.permute.xlu0 %510  ;;  %874 = vmatmul.msk.f32.vlgmr.msrb.gmra.mxu1 %vm209_vm2, %v383_v61  ;;  %v639_v20 = vpop.permute.xlu2 %638 }
 0x22c   :  { %887 = vmatpush.xpose.msk.msra.mxu1 %vm209_vm2, %v507_v10  ;;  %873 = vmatmul.msk.f32.vlgmr.msra.gmra.mxu0 %vm209_vm2, %v381_v62 }
 0x22d   :  { %883 = vmatpush.xpose.msk.msrb.mxu0 %vm209_vm2, %v511_v19  ;;  %858 = vmatmul.msk.f32.vlgmr.msra.gmra.mxu3 %vm81_vm0, %v262_v18 }
 0x22e   :  { %879 = vmatpush.xpose.msk.msra.mxu3 %vm209_vm2, %v443_v11 }
 0x22f   :  { %v348_v28 = vpop.f32.mrf.mxu0 }
 0x230   :  { %888 = vmatpush.xpose.msk.msra.mxu1 %vm209_vm2, %v505_v17 }
 0x231   :  { %884 = vmatpush.xpose.msk.msrb.mxu0 %vm209_vm2, %v509_v8 }
 0x232   :  { %v575_v21 = vpop.permute.xlu1 %574  ;;  %880 = vmatpush.xpose.msk.msra.mxu3 %vm209_vm2, %v441_v9 }
 0x233   :  { %v571_v22 = vpop.permute.xlu0 %570  ;;  %889 = vmatmul.msk.f32.vlgmr.msra.gmra.mxu1 %vm209_vm2, %v509_v8  ;;  %891 = vmatpush.xpose.msk.msrb.mxu2 %vm209_vm2, %v575_v21 }
 0x234   :  { %885 = vmatmul.msk.f32.vlgmr.msrb.gmra.mxu0 %vm209_vm2, %v505_v17 }
 0x235   :  { %899 = vmatpush.xpose.msk.msra.mxu0 %vm209_vm2, %v639_v20  ;;  %865 = vmatmul.msk.f32.vlgmr.msrb.gmra.mxu3 %vm209_vm2, %v1175_v51 }
 0x236   :  { %895 = vmatpush.xpose.msk.msrb.mxu3 %vm209_vm2, %v571_v22 }
 0x23a   :  { %v635_v23 = vpop.permute.xlu1 %634  ;;  %896 = vmatpush.xpose.msk.msrb.mxu3 %vm209_vm2, %v569_v14 }
 0x23b   :  { %v573_v24 = vpop.permute.xlu0 %572  ;;  %890 = vmatmul.msk.f32.gmra.mxu1 %vm209_vm2, %v511_v19 }
 0x23c   :  { %886 = vmatmul.msk.f32.gmra.mxu0 %vm209_vm2, %v507_v10  ;;  %892 = vmatpush.xpose.msk.msrb.mxu2 %vm209_vm2, %v573_v24 }
 0x23d   :  { %903 = vmatpush.xpose.msk.msrb.mxu1 %vm209_vm2, %v635_v23  ;;  %866 = vmatmul.msk.f32.gmra.mxu3 %vm209_vm2, %v1182_v54 }
 0x23f   :  { %893 = vmatmul.msk.f32.vlgmr.msrb.gmra.mxu2 %vm209_vm2, %v569_v14 }
 0x242   :  { %v637_v25 = vpop.permute.xlu1 %636 }
 0x243   :  { %v633_v26 = vpop.permute.xlu0 %632  ;;  %900 = vmatpush.xpose.msk.msra.mxu0 %vm209_vm2, %v637_v25 }
 0x244   :  { %904 = vmatpush.xpose.msk.msrb.mxu1 %vm209_vm2, %v633_v26 }
 0x245   :  { %881 = vmatmul.msk.f32.vlgmr.msra.gmra.mxu3 %vm209_vm2, %v445_v7 }
 0x246   :  { %901 = vmatmul.msk.f32.vlgmr.msra.gmra.mxu0 %vm209_vm2, %v633_v26 }
 0x247   :  { %894 = vmatmul.msk.f32.gmra.mxu2 %vm209_vm2, %v571_v22  ;;  %905 = vmatmul.msk.f32.vlgmr.msrb.gmra.mxu1 %vm209_vm2, %v637_v25 }
 0x24d   :  { %882 = vmatmul.msk.f32.gmra.mxu3 %vm209_vm2, %v447_v6 }
 0x24e   :  { %902 = vmatmul.msk.f32.gmra.mxu0 %vm209_vm2, %v635_v23 }
 0x24f   :  { %906 = vmatmul.msk.f32.gmra.mxu1 %vm209_vm2, %v639_v20 }
 0x255   :  { %897 = vmatmul.msk.f32.vlgmr.msrb.gmra.mxu3 %vm209_vm2, %v573_v24 }
 0x25d   :  { %898 = vmatmul.msk.f32.gmra.mxu3 %vm209_vm2, %v575_v21 }
 0x280   :  { %v409_v29 = vpop.f32.mrf.mxu0 }
 0x29e   :  { %v473_v42 = vpop.f32.mrf.mxu2 }
 0x2a1   :  { %v412_v31 = vpop.f32.mrf.mxu0 }
 0x2a6   :  { %v476_v55 = vpop.f32.mrf.mxu2 }
 0x2a8   :  { %v435_v36 = vpop.f32.mrf.mxu1 }
 0x2a9   :  { %v432_v37 = vpop.f32.mrf.mxu0  ;;  %v436_v51 = vadd.f32 %v435_v36, %v412_v31 }
 0x2aa   :  { %v433_v43 = vadd.f32 %v432_v37, %v409_v29 }
 0x2ab   :  { %v1290_v61 = vmul.f32 0.5, %v436_v51 }
 0x2ac   :  { %v1273_v46 = vmul.f32 0.5, %v433_v43 }
 0x2b0   :  { %v301_v32 = vpop.f32.mrf.mxu3  ;;  %v560_v39 = vpop.f32.mrf.mxu1 }
 0x2b1   :  { %v1267_v33 = vadd.f32 %v945_v30, %v301_v32  ;;  %v537_v40 = vpop.f32.mrf.mxu0 }
 0x2b2   :  { %v561_v8 = vadd.f32 %v560_v39, %v537_v40 }
 0x2b3   :  { %v305_v34 = vsel %vm304_vm3, %v1267_v33, -inf }
 0x2b4   :  { %306 = vmax.xlane.f32.xlu2 %v305_v34  ;;  %v1305_v20 = vmul.f32 0.5, %v561_v8 }
 0x2b8   :  { %v368_v35 = vpop.f32.mrf.mxu3  ;;  %v563_v52 = vpop.f32.mrf.mxu1 }
 0x2b9   :  { %v369_v41 = vadd.f32 %v368_v35, %v345_v27  ;;  %v540_v53 = vpop.f32.mrf.mxu0 }
 0x2ba   :  { %v564_v30 = vadd.f32 %v563_v52, %v540_v53 }
 0x2bb   :  { %v1271_v44 = vmul.f32 0.5, %v369_v41 }
 0x2bd   :  { %v696_v48 = vmax.f32 %v1271_v44, %v1273_v46 }
 0x2c0   :  { %v371_v38 = vpop.f32.mrf.mxu3 }
 0x2c1   :  { %v372_v49 = vadd.f32 %v371_v38, %v348_v28 }
 0x2c2   :  { %v601_v7 = vpop.f32.mrf.mxu2 }
 0x2c3   :  { %v1282_v56 = vmul.f32 0.5, %v372_v49  ;;  %v665_v4 = vpop.f32.mrf.mxu0 }
 0x2c4   :  { %v688_v5 = vpop.f32.mrf.mxu1 }
 0x2c5   :  { %v762_v2 = vmax.f32 %v1282_v56, %v1290_v61  ;;  %v689_v14 = vadd.f32 %v688_v5, %v665_v4 }
 0x2c7   :  { %v1309_v24 = vmul.f32 0.5, %v689_v14 }
 0x2c8   :  { %v496_v45 = vpop.f32.mrf.mxu3 }
 0x2c9   :  { %v497_v47 = vadd.f32 %v496_v45, %v473_v42  ;;  %v567_v45 = vmul.f32 0.5, %v564_v30 }
 0x2ca   :  { %v604_v31 = vpop.f32.mrf.mxu2 }
 0x2cb   :  { %v1277_v50 = vmul.f32 0.5, %v497_v47  ;;  %v668_v27 = vpop.f32.mrf.mxu0 }
 0x2cc   :  { %v691_v28 = vpop.f32.mrf.mxu1 }
 0x2cd   :  { %v1280_v54 = vmax.f32 %v696_v48, %v1277_v50  ;;  %v692_v39 = vadd.f32 %v691_v28, %v668_v27 }
 0x2cf   :  { %v698_v57 = vsub.f32 %v1271_v44, %v1280_v54  ;;  %v701_v58 = vsub.f32 %v1273_v46, %v1280_v54  ;;  %v705_v59 = vsub.f32 %v1277_v50, %v1280_v54  ;;  %v1324_v52 = vmul.f32 0.5, %v692_v39 }
 0x2d0   :  { %v499_v60 = vpop.f32.mrf.mxu3 }
 0x2d1   :  { %v699_v62 = vmul.f32 1.442695, %v698_v57  ;;  %v702_v63 = vmul.f32 1.442695, %v701_v58  ;;  %v500_v0 = vadd.f32 %v499_v60, %v476_v55  ;;  %v706_v1 = vmul.f32 1.442695, %v705_v59 }
 0x2d3   :  { %946 = vpow2.f32 %v699_v62  ;;  %v1294_v3 = vmul.f32 0.5, %v500_v0 }
 0x2d4   :  { %948 = vpow2.f32 %v702_v63 }
 0x2d5   :  { %v1297_v6 = vmax.f32 %v762_v2, %v1294_v3  ;;  %950 = vpow2.f32 %v706_v1 }
 0x2d7   :  { %v764_v9 = vsub.f32 %v1282_v56, %v1297_v6  ;;  %v767_v10 = vsub.f32 %v1290_v61, %v1297_v6  ;;  %v771_v11 = vsub.f32 %v1294_v3, %v1297_v6 }
 0x2d8   :  { %v624_v12 = vpop.f32.mrf.mxu3 }
 0x2d9   :  { %v947_v13 = vpop.eup %946  ;;  %v765_v15 = vmul.f32 1.442695, %v764_v9  ;;  %v768_v16 = vmul.f32 1.442695, %v767_v10  ;;  %v625_v17 = vadd.f32 %v624_v12, %v601_v7  ;;  %v772_v19 = vmul.f32 1.442695, %v771_v11 }
 0x2da   :  { %v949_v18 = vpop.eup %948 }
 0x2db   :  { %952 = vpow2.f32 %v765_v15  ;;  %v1307_v21 = vmul.f32 0.5, %v625_v17  ;;  %v704_v22 = vadd.f32 %v949_v18, %v947_v13  ;;  %v951_v23 = vpop.eup %950 }
 0x2dc   :  { %954 = vpow2.f32 %v768_v16 }
 0x2dd   :  { %v715_v25 = vmax.f32 %v1305_v20, %v1307_v21  ;;  %v708_v26 = vadd.f32 %v951_v23, %v704_v22  ;;  %956 = vpow2.f32 %v772_v19 }
 0x2df   :  { %v1314_v29 = vmax.f32 %v715_v25, %v1309_v24  ;;  %958 = vlog2.f32 %v708_v26 }
 0x2e0   :  { %v627_v32 = vpop.f32.mrf.mxu3 }
 0x2e1   :  { %v953_v34 = vpop.eup %952  ;;  %v717_v35 = vsub.f32 %v1305_v20, %v1314_v29  ;;  %v720_v36 = vsub.f32 %v1307_v21, %v1314_v29  ;;  %v628_v37 = vadd.f32 %v627_v32, %v604_v31  ;;  %v724_v49 = vsub.f32 %v1309_v24, %v1314_v29 }
 0x2e2   :  { %v955_v38 = vpop.eup %954 }
 0x2e3   :  { %v718_v40 = vmul.f32 1.442695, %v717_v35  ;;  %v721_v41 = vmul.f32 1.442695, %v720_v36  ;;  %v770_v42 = vadd.f32 %v955_v38, %v953_v34  ;;  %v957_v43 = vpop.eup %956  ;;  %v1320_v47 = vmul.f32 0.5, %v628_v37 }
 0x2e4   :  { %v725_v59 = vmul.f32 1.442695, %v724_v49 }
 0x2e5   :  { %v959_v48 = vpop.eup %958  ;;  %v774_v51 = vadd.f32 %v957_v43, %v770_v42  ;;  %960 = vpow2.f32 %v718_v40  ;;  %v781_v53 = vmax.f32 %v567_v45, %v1320_v47 }
 0x2e6   :  { %v710_v55 = vmul.f32 0.6931472, %v959_v48  ;;  %962 = vpow2.f32 %v721_v41 }
 0x2e7   :  { %v782_v57 = vmax.f32 %v781_v53, %v1324_v52  ;;  %964 = vlog2.f32 %v774_v51 }
 0x2e8   :  { %v1329_v58 = vadd.f32 %v710_v55, %v1280_v54  ;;  %966 = vpow2.f32 %v725_v59 }
 0x2e9   :  { %v783_v60 = vsub.f32 %v567_v45, %v782_v57  ;;  %v786_v62 = vsub.f32 %v1320_v47, %v782_v57  ;;  %v790_v63 = vsub.f32 %v1324_v52, %v782_v57 }
 0x2ea   :  { %v713_v0 = vsub.f32 %v1273_v46, %v1329_v58  ;;  %v712_v1 = vsub.f32 %v1271_v44, %v1329_v58  ;;  %v714_v46 = vsub.f32 %v1277_v50, %v1329_v58 }
 0x2eb   :  { %v961_v2 = vpop.eup %960  ;;  %v784_v4 = vmul.f32 1.442695, %v783_v60  ;;  %v787_v5 = vmul.f32 1.442695, %v786_v62  ;;  %v791_v7 = vmul.f32 1.442695, %v790_v63 }
 0x2ec   :  { %735 = vrot.lane.b32.xlu1 %v713_v0, %s1086_s10  ;;  %v963_v54 = vpop.eup %962 }
 0x2ed   :  { %v965_v8 = vpop.eup %964  ;;  %968 = vpow2.f32 %v784_v4  ;;  %v723_v10 = vadd.f32 %v963_v54, %v961_v2 }
 0x2ee   :  { %970 = vpow2.f32 %v787_v5  ;;  %v776_v9 = vmul.f32 0.6931472, %v965_v8  ;;  %v967_v12 = vpop.eup %966 }
 0x2ef   :  { %972 = vpow2.f32 %v791_v7  ;;  %v727_v16 = vadd.f32 %v967_v12, %v723_v10 }
 0x2f0   :  { %v777_v11 = vadd.f32 %v776_v9, %v1297_v6 }
 0x2f1   :  { %974 = vlog2.f32 %v727_v16 }
 0x2f2   :  { %v779_v13 = vsub.f32 %v1290_v61, %v777_v11  ;;  %v778_v22 = vsub.f32 %v1282_v56, %v777_v11  ;;  %v780_v25 = vsub.f32 %v1294_v3, %v777_v11 }
 0x2f3   :  { %v969_v14 = vpop.eup %968 }
 0x2f4   :  { %739 = vrot.lane.b32.xlu1 %v714_v46, %s1089_s14  ;;  %v971_v15 = vpop.eup %970 }
 0x2f5   :  { %v789_v17 = vadd.f32 %v971_v15, %v969_v14  ;;  %v973_v18 = vpop.eup %972 }
 0x2f7   :  { %v793_v19 = vadd.f32 %v973_v18, %v789_v17  ;;  %v975_v6 = vpop.eup %974 }
 0x2f8   :  { %v729_v61 = vmul.f32 0.6931472, %v975_v6 }
 0x2f9   :  { %976 = vlog2.f32 %v793_v19 }
 0x2fa   :  { %v730_v30 = vadd.f32 %v729_v61, %v1314_v29 }
 0x2fc   :  { %801 = vrot.lane.b32.xlu1 %v778_v22, %s1097_s5  ;;  %v731_v56 = vsub.f32 %v1305_v20, %v730_v30  ;;  %v732_v31 = vsub.f32 %v1307_v21, %v730_v30  ;;  %v733_v3 = vsub.f32 %v1309_v24, %v730_v30 }
 0x2ff   :  { %v977_v23 = vpop.eup %976 }
 0x300   :  { %v795_v50 = vmul.f32 0.6931472, %v977_v23 }
 0x302   :  { %v796_v26 = vadd.f32 %v795_v50, %v782_v57 }
 0x304   :  { %805 = vrot.lane.b32.xlu1 %v780_v25, %s1086_s10  ;;  %v797_v27 = vsub.f32 %v567_v45, %v796_v26  ;;  %v798_v28 = vsub.f32 %v1320_v47, %v796_v26  ;;  %v799_v32 = vsub.f32 %v1324_v52, %v796_v26 }
 0x306   :  { %809 = vrot.lane.b32.xlu2 %v797_v27, %s1089_s14 }
 0x30c   :  { %743 = vrot.lane.b32.xlu1 %v731_v56, %s1098_s15 }
 0x314   :  { %747 = vrot.lane.b32.xlu1 %v732_v31, %s1091_s22 }
 0x31c   :  { %751 = vrot.lane.b32.xlu1 %v733_v3, %s1099_s16 }
 0x324   :  { %817 = vrot.lane.b32.xlu1 %v799_v32, %s1091_s22 }
 0x327   :  { %v307_v34 = vpop.xlane.xlu2 %306 }
 0x328   :  { %v308_v29 = vsub.f32 %v1267_v33, %v307_v34 }
 0x32a   :  { %v309_v35 = vmul.f32 1.442695, %v308_v29 }
 0x32c   :  { %978 = vpow2.f32 %v309_v35 }
 0x332   :  { %v979_v20 = vpop.eup %978 }
 0x333   :  { %v311_v36 = vsel %vm304_vm3, %v979_v20, 0.0 }
 0x334   :  { %312 = vadd.xlane.f32.xlu0 %v311_v36 }
 0x348   :  { %813 = vrot.lane.b32.xlu0 %v798_v28, %s1098_s15 }
 0x35e   :  { %v736_v21 = vpop.permute.xlu1 %735 }
 0x35f   :  { %v755_v33 = vsel %vm754_vm4, %v712_v1, %v736_v21 }
 0x360   :  { %v810_v55 = vpop.permute.xlu2 %809 }
 0x366   :  { %v740_v37 = vpop.permute.xlu1 %739 }
 0x367   :  { %v756_v43 = vsel %vm209_vm2, %v755_v33, %v740_v37 }
 0x36e   :  { %v802_v24 = vpop.permute.xlu1 %801 }
 0x36f   :  { %v820_v38 = vsel %vm754_vm4, %v802_v24, %v779_v13 }
 0x376   :  { %v806_v39 = vpop.permute.xlu1 %805 }
 0x377   :  { %v821_v40 = vsel %vm209_vm2, %v820_v38, %v806_v39 }
 0x378   :  { %v822_v58 = vsel %vm757_vm5, %v821_v40, %v810_v55 }
 0x37e   :  { %v744_v41 = vpop.permute.xlu1 %743 }
 0x37f   :  { %v758_v45 = vsel %vm757_vm5, %v756_v43, %v744_v41 }
 0x386   :  { %v748_v42 = vpop.permute.xlu1 %747 }
 0x387   :  { %v759_v47 = vsel %vm81_vm0, %v758_v45, %v748_v42 }
 0x38e   :  { %v752_v48 = vpop.permute.xlu1 %751 }
 0x38f   :  { %v761_v49 = vsel %vm760_vm6, %v759_v47, %v752_v48 }
 0x390   :  { %826 = vst.msk [vmem:[%s1386_s6] sm:$0xff] %vm825_vm7, %v761_v49 }
 0x396   :  { %v818_v59 = vpop.permute.xlu1 %817 }
 0x3a7   :  { %v313_v51 = vpop.xlane.xlu0 %312 }
 0x3a8   :  { %980 = vlog2.f32 %v313_v51 }
 0x3ae   :  { %v981_v44 = vpop.eup %980 }
 0x3af   :  { %v315_v52 = vmul.f32 0.6931472, %v981_v44 }
 0x3b1   :  { %v316_v53 = vsub.f32 %v308_v29, %v315_v52 }
 0x3b3   :  { %317 = vst.msk [vmem:[#allocation8] sm:$0x3] %vm304_vm3, %v316_v53 }
 0x3b4   :  { %840 = dma.vmem_to_hbm [thread:$0]  %s836_s18, 32, %s838_s19, [#allocation4]  }
 0x3ba   :  { %v814_v57 = vpop.permute.xlu0 %813 }
 0x3bb   :  { %v823_v60 = vsel %vm81_vm0, %v822_v58, %v814_v57 }
 0x3bc   :  { %v824_v62 = vsel %vm760_vm6, %v823_v60, %v818_v59 }
 0x3bd   :  { %827 = vst.msk [vmem:[%s1386_s6 + $0x8] sm:$0xff] %vm825_vm7, %v824_v62 }
 0x3be   :  { %1082 = dma.done.wait [#allocation4], 32  }
 0x3bf   :  { %1083 = vsyncadd [#allocation4], 4294967264 }
 0x3c0   :  { %847 = vsyncpa [#allocation3], 1 }
 0x3c1   :  { %848 = vsyncpa [#allocation6], 1 }
 0x3c2   :  { %849 = vsyncpa [#allocation4], 1 }

</bundles_post_ra>
